<compile_context>
chip_gen: v6e
topology: v6e:2x2x1
jax: 0.10.0
libtpu: 0.0.40
codegen_flags: <defaults>
</compile_context>

<pallas_src>
import functools

import jax
import jax.numpy as jnp
from jax.experimental import pallas as pl
from jax.experimental.pallas import tpu as pltpu

LANE = 128
_BN_EPS = 1e-5


def _round_up(n, m):
    return ((n + m - 1) // m) * m


# ----------------------------- fused kernel -------------------------------- #

def _fused_mlp_kernel(x_ref, w_in_ref, gamma_ref, beta_ref, w_blk_ref,
                      w_out_ref, o_ref, h_ref, *, eps):
    l = pl.program_id(0)
    last = pl.num_programs(0) - 1
    b = h_ref.shape[0]
    inv_b = 1.0 / b

    # Step 0: first Linear.  h = x @ W_in^T  (weights pre-transposed to
    # [in, out] and bf16; f32 accumulation on the MXU).
    @pl.when(l == 0)
    def _first_linear():
        h_ref[...] = jnp.dot(x_ref[...].astype(jnp.bfloat16), w_in_ref[...],
                             preferred_element_type=jnp.float32)

    # Steps 1..nb: BatchNorm1d (train-mode batch stats, f32) -> ReLU -> Linear.
    # The block weight tile for this step was prefetched by the BlockSpec
    # pipeline while the previous step computed.
    @pl.when(jnp.logical_and(l > 0, l < last))
    def _bn_relu_linear():
        h = h_ref[...]                                          # [B, Hp], f32
        # BN statistics via MXU ones-row matmuls (keeps the XLU/VALU free).
        ones_row = jnp.ones((1, b), jnp.float32)
        colsum = jnp.dot(ones_row, h, preferred_element_type=jnp.float32)
        colsum_sq = jnp.dot(ones_row, h * h,
                            preferred_element_type=jnp.float32)
        mean = colsum * inv_b                                   # [1, Hp]
        var = jnp.maximum(colsum_sq * inv_b - mean * mean, 0.0)  # biased, >= 0
        xhat = (h - mean) * jax.lax.rsqrt(var + eps)
        y = xhat * gamma_ref[0] + beta_ref[0]                   # BN affine
        y = jnp.maximum(y, 0.0)                                 # ReLU
        h_ref[...] = jnp.dot(y.astype(jnp.bfloat16), w_blk_ref[0],
                             preferred_element_type=jnp.float32)

    # Step nb+1: final Linear, lane-dense padded store (sliced outside).
    @pl.when(l == last)
    def _final_linear():
        o_ref[...] = jnp.dot(h_ref[...].astype(jnp.bfloat16), w_out_ref[...],
                             preferred_element_type=jnp.float32
                             ).astype(o_ref.dtype)


# ----------------------------- param packing ------------------------------- #

def init_mlp_params(key, input_dim, hidden_dim, num_layers, output_dim):
    """Parameters in the torch module's native layout (Linear weight [out, in])."""
    params = {}
    k = key

    def uniform_like_torch_linear(k, out_f, in_f):
        # PyTorch Linear default init: U(-1/sqrt(in), 1/sqrt(in))
        bound = 1.0 / jnp.sqrt(jnp.float32(in_f))
        return jax.random.uniform(
            k, (out_f, in_f), jnp.float32, minval=-bound, maxval=bound)

    k, sub = jax.random.split(k)
    params["w_in"] = uniform_like_torch_linear(sub, hidden_dim, input_dim)

    params["blocks"] = []
    for _ in range(num_layers - 2):
        k, sub = jax.random.split(k)
        params["blocks"].append({
            "gamma": jnp.ones((hidden_dim,), jnp.float32),   # BN default
            "beta": jnp.zeros((hidden_dim,), jnp.float32),   # BN default
            "w": uniform_like_torch_linear(sub, hidden_dim, hidden_dim),
        })

    k, sub = jax.random.split(k)
    params["w_out"] = uniform_like_torch_linear(sub, output_dim, hidden_dim)
    return params


def pack_params(params, input_dim, hidden_dim, output_dim):
    """One-time prep: transpose to [in, out], zero-pad to 128-lane multiples,
    cast weights to bf16, stack per-block weights/affines for streaming."""
    Dp = _round_up(input_dim, LANE)
    Hp = _round_up(hidden_dim, LANE)
    Op = _round_up(output_dim, LANE)

    def pad_t_bf16(w, in_p, out_p):
        wt = w.T                                              # [in, out]
        wt = jnp.pad(wt, ((0, in_p - wt.shape[0]), (0, out_p - wt.shape[1])))
        return wt.astype(jnp.bfloat16)

    nb = len(params["blocks"])
    w_in_t = pad_t_bf16(params["w_in"], Dp, Hp)
    if nb > 0:
        w_blk_t = jnp.stack([pad_t_bf16(b["w"], Hp, Hp)
                             for b in params["blocks"]])       # [nb, Hp, Hp]
        gammas = jnp.stack([
            jnp.pad(b["gamma"], (0, Hp - hidden_dim), constant_values=1.0)
            for b in params["blocks"]])[:, None, :]            # [nb, 1, Hp] f32
        betas = jnp.stack([
            jnp.pad(b["beta"], (0, Hp - hidden_dim))
            for b in params["blocks"]])[:, None, :]            # [nb, 1, Hp] f32
    else:
        # Dummy tiles keep the traced block branch well-typed; it never runs.
        w_blk_t = jnp.zeros((1, Hp, Hp), jnp.bfloat16)
        gammas = jnp.ones((1, 1, Hp), jnp.float32)
        betas = jnp.zeros((1, 1, Hp), jnp.float32)
    w_out_t = pad_t_bf16(params["w_out"], Hp, Op)

    return {
        "w_in_t": w_in_t, "gammas": gammas, "betas": betas,
        "w_blk_t": w_blk_t, "w_out_t": w_out_t,
        "num_blocks": nb,
        "dims": (input_dim, hidden_dim, output_dim),
        "padded_dims": (Dp, Hp, Op),
    }


# ----------------------------- forward -------------------------------------- #

def mlp_forward(packed, x):
    D, H, O = packed["dims"]
    Dp, Hp, Op = packed["padded_dims"]
    B = x.shape[0]
    nb = packed["num_blocks"]

    # Pad features only.  The batch axis stays exact (and fully VMEM resident)
    # so train-mode BatchNorm's full-batch statistics match the reference.
    # TODO(synk): two-pass / accumulated BN stats would allow tiling the batch
    # axis (and marking it "parallel") for large B.
    x_p = jnp.pad(x, ((0, 0), (0, Dp - D)))

    blk_hi = max(nb, 1) - 1
    grid = (nb + 2,)

    # Resident blocks (constant index -> fetched once): x, w_in, w_out, out.
    # Streamed blocks (per-layer index -> auto double-buffered): w_blk, gamma,
    # beta.  Index is clamped so steps 0 and last reuse an adjacent layer's
    # tile instead of going out of bounds (no extra DMA, value unused there).
    def blk_idx(l):
        return (jnp.clip(l - 1, 0, blk_hi), 0, 0)

    in_specs = [
        pl.BlockSpec((B, Dp), lambda l: (0, 0)),          # x
        pl.BlockSpec((Dp, Hp), lambda l: (0, 0)),         # w_in (bf16)
        pl.BlockSpec((1, 1, Hp), blk_idx),                # gamma (f32)
        pl.BlockSpec((1, 1, Hp), blk_idx),                # beta  (f32)
        pl.BlockSpec((1, Hp, Hp), blk_idx),               # w_blk (bf16)
        pl.BlockSpec((Hp, Op), lambda l: (0, 0)),         # w_out (bf16)
    ]
    out_specs = pl.BlockSpec((B, Op), lambda l: (0, 0))

    # VMEM budget derived from actual buffers (double-buffer everything for
    # headroom), capped safely below v7x's 64 MiB physical VMEM.
    resident = (B * Dp * 4 + Dp * Hp * 2 + Hp * Op * 2 + B * Op * 4
                + B * Hp * 4)                               # x, w_in, w_out, out, h
    streamed = 2 * (Hp * Hp * 2 + 2 * Hp * 4)               # w_blk + gamma + beta
    vmem_limit = int(min(max(2 * (resident + streamed) + (4 << 20), 16 << 20),
                         56 << 20))

    flops = (2 * B * (Dp * Hp + nb * Hp * Hp + Hp * Op)     # Linear layers
             + nb * (4 * B * Hp + 10 * B * Hp))             # BN stat matmuls + elementwise
    bytes_accessed = (B * Dp * 4 + Dp * Hp * 2 + nb * Hp * Hp * 2
                      + nb * 2 * Hp * 4 + Hp * Op * 2 + B * Op * 4)

    out = pl.pallas_call(
        functools.partial(_fused_mlp_kernel, eps=_BN_EPS),
        out_shape=jax.ShapeDtypeStruct((B, Op), jnp.float32),
        grid_spec=pltpu.PrefetchScalarGridSpec(
            num_scalar_prefetch=0,
            grid=grid,
            in_specs=in_specs,
            out_specs=out_specs,
            scratch_shapes=[pltpu.VMEM((B, Hp), jnp.float32)],  # resident h
        ),
        compiler_params=pltpu.CompilerParams(
            dimension_semantics=("arbitrary",),
            vmem_limit_bytes=vmem_limit),
        cost_estimate=pl.CostEstimate(
            flops=flops, transcendentals=nb * Hp,
            bytes_accessed=bytes_accessed),
    )(x_p, packed["w_in_t"], packed["gammas"], packed["betas"],
      packed["w_blk_t"], packed["w_out_t"])

    return out[:, :O]


# ----------------------------- references ----------------------------------- #

def mlp_forward_ref(params, x, eps=_BN_EPS):
    """Pure f32 reference (exact module semantics, train-mode BN)."""
    h = x @ params["w_in"].T
    for blk in params["blocks"]:
        mean = jnp.mean(h, axis=0, keepdims=True)
        var = jnp.mean((h - mean) ** 2, axis=0, keepdims=True)
        hhat = (h - mean) / jnp.sqrt(var + eps)
        h = hhat * blk["gamma"][None, :] + blk["beta"][None, :]
        h = jnp.maximum(h, 0.0)
        h = h @ blk["w"].T
    return h @ params["w_out"].T


def mlp_forward_ref_bf16(params, x, eps=_BN_EPS):
    """Reference with the kernel's bf16 matmul operand casts (f32 accum / BN)."""
    c = lambda a: a.astype(jnp.bfloat16)
    h = jnp.dot(c(x), c(params["w_in"].T), preferred_element_type=jnp.float32)
    for blk in params["blocks"]:
        mean = jnp.mean(h, axis=0, keepdims=True)
        var = jnp.mean((h - mean) ** 2, axis=0, keepdims=True)
        hhat = (h - mean) / jnp.sqrt(var + eps)
        y = hhat * blk["gamma"][None, :] + blk["beta"][None, :]
        y = jnp.maximum(y, 0.0)
        h = jnp.dot(c(y), c(blk["w"].T), preferred_element_type=jnp.float32)
    return jnp.dot(c(h), c(params["w_out"].T),
                   preferred_element_type=jnp.float32)


# ----------------------------- main ------------------------------------------ #

if __name__ == "__main__":
    # Small shapes consistent with the module's forward: X is [batch, input_dim].
    batch = 8
    input_dim = 16
    hidden_dim = 32
    num_layers = 4   # => 2 BN+ReLU+Linear blocks
    output_dim = 2

    key = jax.random.PRNGKey(0)
    kx, kp = jax.random.split(key)
    x = jax.random.normal(kx, (batch, input_dim), jnp.float32)

    params = init_mlp_params(kp, input_dim, hidden_dim, num_layers, output_dim)
    packed = pack_params(params, input_dim, hidden_dim, output_dim)

    out = mlp_forward(packed, x)
    out = jax.block_until_ready(out)

    assert out.shape == (batch, output_dim), out.shape
    # Kernel vs matched bf16-operand reference: tight tolerance.
    ref_bf16 = mlp_forward_ref_bf16(params, x)
    assert jnp.allclose(out, ref_bf16, atol=2e-3, rtol=2e-3), (out, ref_bf16)
    # Kernel vs pure f32 reference: looser tolerance (bf16 weight quantization).
    ref_f32 = mlp_forward_ref(params, x)
    assert jnp.allclose(out, ref_f32, atol=5e-2, rtol=5e-2), (out, ref_f32)

    print("KERNEL_OK")
</pallas_src>

<mosaic_0001>
module attributes {stable_mosaic.version = 11 : i64} {
  func.func @_fused_mlp_kernel(%arg0: i32, %arg1: memref<8x128xf32, #tpu.memory_space<vmem>>, %arg2: memref<128x128xbf16, #tpu.memory_space<vmem>>, %arg3: memref<1x1x128xf32, #tpu.memory_space<vmem>>, %arg4: memref<1x1x128xf32, #tpu.memory_space<vmem>>, %arg5: memref<1x128x128xbf16, #tpu.memory_space<vmem>>, %arg6: memref<128x128xbf16, #tpu.memory_space<vmem>>, %arg7: memref<8x128xf32, #tpu.memory_space<vmem>>, %arg8: memref<8x128xf32, #tpu.memory_space<vmem>>) attributes {dimension_semantics = [#tpu.dimension_semantics<arbitrary>], iteration_bounds = array<i64: 4>, scalar_prefetch = 0 : i64, scratch_operands = 1 : i64, tpu.core_type = #tpu.core_type<tc>, window_params = [{pipeline_mode = #tpu.pipeline_mode<synchronous>, transform_indices = @transform_0, window_bounds = array<i64: 8, 128>}, {pipeline_mode = #tpu.pipeline_mode<synchronous>, transform_indices = @transform_1, window_bounds = array<i64: 128, 128>}, {transform_indices = @transform_2, window_bounds = array<i64: 1, 1, 128>}, {transform_indices = @transform_3, window_bounds = array<i64: 1, 1, 128>}, {transform_indices = @transform_4, window_bounds = array<i64: 1, 128, 128>}, {pipeline_mode = #tpu.pipeline_mode<synchronous>, transform_indices = @transform_5, window_bounds = array<i64: 128, 128>}, {pipeline_mode = #tpu.pipeline_mode<synchronous>, transform_indices = @transform_6, window_bounds = array<i64: 8, 128>}]} {
    %c0_i32 = arith.constant 0 : i32
    %0 = arith.cmpi eq, %arg0, %c0_i32 : i32
    %1 = arith.extui %0 : i1 to i32
    %c0_i32_0 = arith.constant 0 : i32
    %2 = arith.cmpi ne, %1, %c0_i32_0 : i32
    scf.if %2 {
      %c0 = arith.constant 0 : index
      %c0_5 = arith.constant 0 : index
      %11 = vector.load %arg1[%c0, %c0_5] : memref<8x128xf32, #tpu.memory_space<vmem>>, vector<8x128xf32>
      %12 = arith.truncf %11 : vector<8x128xf32> to vector<8x128xbf16>
      %c0_6 = arith.constant 0 : index
      %c0_7 = arith.constant 0 : index
      %13 = vector.load %arg2[%c0_6, %c0_7] : memref<128x128xbf16, #tpu.memory_space<vmem>>, vector<128x128xbf16>
      %cst = arith.constant dense<0.000000e+00> : vector<8x128xf32>
      %14 = tpu.matmul %12, %13, %cst {dimension_numbers = #tpu.dot_dimension_numbers<[1], [0], [0], [1], [0, 0, 1, 1], [], []>} : vector<8x128xbf16>, vector<128x128xbf16>, vector<8x128xf32> -> vector<8x128xf32>
      %c0_8 = arith.constant 0 : index
      %c0_9 = arith.constant 0 : index
      %15 = vector.load %arg8[%c0_8, %c0_9] : memref<8x128xf32, #tpu.memory_space<vmem>>, vector<8x128xf32>
      tpu.vector_store %arg8[%c0_8, %c0_9], %14 {strides = array<i32>} : memref<8x128xf32, #tpu.memory_space<vmem>>, vector<8x128xf32>,
    } else {
    }
    %c0_i32_1 = arith.constant 0 : i32
    %3 = arith.cmpi sgt, %arg0, %c0_i32_1 : i32
    %c3_i32 = arith.constant 3 : i32
    %4 = arith.cmpi slt, %arg0, %c3_i32 : i32
    %5 = arith.andi %3, %4 : i1
    %6 = arith.extui %5 : i1 to i32
    %c0_i32_2 = arith.constant 0 : i32
    %7 = arith.cmpi ne, %6, %c0_i32_2 : i32
    scf.if %7 {
      %c0 = arith.constant 0 : index
      %c0_5 = arith.constant 0 : index
      %11 = vector.load %arg8[%c0, %c0_5] : memref<8x128xf32, #tpu.memory_space<vmem>>, vector<8x128xf32>
      %cst = arith.constant 1.000000e+00 : f32
      %12 = vector.broadcast %cst : f32 to vector<1x8xf32>
      %cst_6 = arith.constant dense<0.000000e+00> : vector<1x128xf32>
      %13 = tpu.matmul %12, %11, %cst_6 {dimension_numbers = #tpu.dot_dimension_numbers<[1], [0], [0], [1], [0, 0, 1, 1], [], []>} : vector<1x8xf32>, vector<8x128xf32>, vector<1x128xf32> -> vector<1x128xf32>
      %14 = arith.mulf %11, %11 : vector<8x128xf32>
      %cst_7 = arith.constant dense<0.000000e+00> : vector<1x128xf32>
      %15 = tpu.matmul %12, %14, %cst_7 {dimension_numbers = #tpu.dot_dimension_numbers<[1], [0], [0], [1], [0, 0, 1, 1], [], []>} : vector<1x8xf32>, vector<8x128xf32>, vector<1x128xf32> -> vector<1x128xf32>
      %cst_8 = arith.constant 1.250000e-01 : f32
      %16 = vector.broadcast %cst_8 : f32 to vector<1x128xf32>
      %17 = arith.mulf %13, %16 : vector<1x128xf32>
      %cst_9 = arith.constant 1.250000e-01 : f32
      %18 = vector.broadcast %cst_9 : f32 to vector<1x128xf32>
      %19 = arith.mulf %15, %18 : vector<1x128xf32>
      %20 = arith.mulf %17, %17 : vector<1x128xf32>
      %21 = arith.subf %19, %20 : vector<1x128xf32>
      %cst_10 = arith.constant 0.000000e+00 : f32
      %22 = vector.broadcast %cst_10 : f32 to vector<1x128xf32>
      %23 = arith.maximumf %21, %22 : vector<1x128xf32>
      %24 = vector.broadcast %17 : vector<1x128xf32> to vector<8x128xf32>
      %25 = arith.subf %11, %24 : vector<8x128xf32>
      %cst_11 = arith.constant 9.99999974E-6 : f32
      %26 = vector.broadcast %cst_11 : f32 to vector<1x128xf32>
      %27 = arith.addf %23, %26 : vector<1x128xf32>
      %28 = math.rsqrt %27 : vector<1x128xf32>
      %29 = vector.broadcast %28 : vector<1x128xf32> to vector<8x128xf32>
      %30 = arith.mulf %25, %29 : vector<8x128xf32>
      %c0_12 = arith.constant 0 : index
      %c0_13 = arith.constant 0 : index
      %c0_14 = arith.constant 0 : index
      %31 = vector.load %arg3[%c0_12, %c0_13, %c0_14] : memref<1x1x128xf32, #tpu.memory_space<vmem>>, vector<1x1x128xf32>
      %32 = vector.shape_cast %31 : vector<1x1x128xf32> to vector<1x128xf32>
      %33 = vector.broadcast %32 : vector<1x128xf32> to vector<8x128xf32>
      %34 = arith.mulf %30, %33 : vector<8x128xf32>
      %c0_15 = arith.constant 0 : index
      %c0_16 = arith.constant 0 : index
      %c0_17 = arith.constant 0 : index
      %35 = vector.load %arg4[%c0_15, %c0_16, %c0_17] : memref<1x1x128xf32, #tpu.memory_space<vmem>>, vector<1x1x128xf32>
      %36 = vector.shape_cast %35 : vector<1x1x128xf32> to vector<1x128xf32>
      %37 = vector.broadcast %36 : vector<1x128xf32> to vector<8x128xf32>
      %38 = arith.addf %34, %37 : vector<8x128xf32>
      %cst_18 = arith.constant 0.000000e+00 : f32
      %39 = vector.broadcast %cst_18 : f32 to vector<8x128xf32>
      %40 = arith.maximumf %38, %39 : vector<8x128xf32>
      %41 = arith.truncf %40 : vector<8x128xf32> to vector<8x128xbf16>
      %c0_19 = arith.constant 0 : index
      %c0_20 = arith.constant 0 : index
      %c0_21 = arith.constant 0 : index
      %42 = vector.load %arg5[%c0_19, %c0_20, %c0_21] : memref<1x128x128xbf16, #tpu.memory_space<vmem>>, vector<1x128x128xbf16>
      %43 = vector.shape_cast %42 : vector<1x128x128xbf16> to vector<128x128xbf16>
      %cst_22 = arith.constant dense<0.000000e+00> : vector<8x128xf32>
      %44 = tpu.matmul %41, %43, %cst_22 {dimension_numbers = #tpu.dot_dimension_numbers<[1], [0], [0], [1], [0, 0, 1, 1], [], []>} : vector<8x128xbf16>, vector<128x128xbf16>, vector<8x128xf32> -> vector<8x128xf32>
      %c0_23 = arith.constant 0 : index
      %c0_24 = arith.constant 0 : index
      %45 = vector.load %arg8[%c0_23, %c0_24] : memref<8x128xf32, #tpu.memory_space<vmem>>, vector<8x128xf32>
      tpu.vector_store %arg8[%c0_23, %c0_24], %44 {strides = array<i32>} : memref<8x128xf32, #tpu.memory_space<vmem>>, vector<8x128xf32>,
    } else {
    }
    %c3_i32_3 = arith.constant 3 : i32
    %8 = arith.cmpi eq, %arg0, %c3_i32_3 : i32
    %9 = arith.extui %8 : i1 to i32
    %c0_i32_4 = arith.constant 0 : i32
    %10 = arith.cmpi ne, %9, %c0_i32_4 : i32
    scf.if %10 {
      %c0 = arith.constant 0 : index
      %c0_5 = arith.constant 0 : index
      %11 = vector.load %arg8[%c0, %c0_5] : memref<8x128xf32, #tpu.memory_space<vmem>>, vector<8x128xf32>
      %12 = arith.truncf %11 : vector<8x128xf32> to vector<8x128xbf16>
      %c0_6 = arith.constant 0 : index
      %c0_7 = arith.constant 0 : index
      %13 = vector.load %arg6[%c0_6, %c0_7] : memref<128x128xbf16, #tpu.memory_space<vmem>>, vector<128x128xbf16>
      %cst = arith.constant dense<0.000000e+00> : vector<8x128xf32>
      %14 = tpu.matmul %12, %13, %cst {dimension_numbers = #tpu.dot_dimension_numbers<[1], [0], [0], [1], [0, 0, 1, 1], [], []>} : vector<8x128xbf16>, vector<128x128xbf16>, vector<8x128xf32> -> vector<8x128xf32>
      %c0_8 = arith.constant 0 : index
      %c0_9 = arith.constant 0 : index
      %15 = vector.load %arg7[%c0_8, %c0_9] : memref<8x128xf32, #tpu.memory_space<vmem>>, vector<8x128xf32>
      tpu.vector_store %arg7[%c0_8, %c0_9], %14 {strides = array<i32>} : memref<8x128xf32, #tpu.memory_space<vmem>>, vector<8x128xf32>,
    } else {
    }
    return
  }
  func.func @transform_0(%arg0: i32) -> (i32, i32) {
    %c0_i32 = arith.constant 0 : i32
    %c0_i32_0 = arith.constant 0 : i32
    %c0_i32_1 = arith.constant 0 : i32
    return %c0_i32, %c0_i32_0 : i32, i32
  }
  func.func @transform_1(%arg0: i32) -> (i32, i32) {
    %c0_i32 = arith.constant 0 : i32
    %c0_i32_0 = arith.constant 0 : i32
    %c0_i32_1 = arith.constant 0 : i32
    return %c0_i32, %c0_i32_0 : i32, i32
  }
  func.func @transform_2(%arg0: i32) -> (i32, i32, i32) {
    %c1_i32 = arith.constant 1 : i32
    %0 = arith.subi %arg0, %c1_i32 : i32
    %c0_i32 = arith.constant 0 : i32
    %c1_i32_0 = arith.constant 1 : i32
    %1 = arith.maxsi %c0_i32, %0 : i32
    %2 = arith.minsi %c1_i32_0, %1 : i32
    %c0_i32_1 = arith.constant 0 : i32
    %c0_i32_2 = arith.constant 0 : i32
    %c0_i32_3 = arith.constant 0 : i32
    return %2, %c0_i32_1, %c0_i32_2 : i32, i32, i32
  }
  func.func @transform_3(%arg0: i32) -> (i32, i32, i32) {
    %c1_i32 = arith.constant 1 : i32
    %0 = arith.subi %arg0, %c1_i32 : i32
    %c0_i32 = arith.constant 0 : i32
    %c1_i32_0 = arith.constant 1 : i32
    %1 = arith.maxsi %c0_i32, %0 : i32
    %2 = arith.minsi %c1_i32_0, %1 : i32
    %c0_i32_1 = arith.constant 0 : i32
    %c0_i32_2 = arith.constant 0 : i32
    %c0_i32_3 = arith.constant 0 : i32
    return %2, %c0_i32_1, %c0_i32_2 : i32, i32, i32
  }
  func.func @transform_4(%arg0: i32) -> (i32, i32, i32) {
    %c1_i32 = arith.constant 1 : i32
    %0 = arith.subi %arg0, %c1_i32 : i32
    %c0_i32 = arith.constant 0 : i32
    %c1_i32_0 = arith.constant 1 : i32
    %1 = arith.maxsi %c0_i32, %0 : i32
    %2 = arith.minsi %c1_i32_0, %1 : i32
    %c0_i32_1 = arith.constant 0 : i32
    %c0_i32_2 = arith.constant 0 : i32
    %c0_i32_3 = arith.constant 0 : i32
    return %2, %c0_i32_1, %c0_i32_2 : i32, i32, i32
  }
  func.func @transform_5(%arg0: i32) -> (i32, i32) {
    %c0_i32 = arith.constant 0 : i32
    %c0_i32_0 = arith.constant 0 : i32
    %c0_i32_1 = arith.constant 0 : i32
    return %c0_i32, %c0_i32_0 : i32, i32
  }
  func.func @transform_6(%arg0: i32) -> (i32, i32) {
    %c0_i32 = arith.constant 0 : i32
    %c0_i32_0 = arith.constant 0 : i32
    %c0_i32_1 = arith.constant 0 : i32
    return %c0_i32, %c0_i32_0 : i32, i32
  }
}

</mosaic_0001>

<bundles_post_ra>
// kernel: tpu_custom_call.1
= control target key start
LH: loop header
LB: loop body
LE: loop exit
PB: predicated region body
PF: predicated region fallthrough
CT: control target
= control target key end

     0   :  { %11 = vsyncpa [#allocation4], 0  ;;  %s1818_s0 = inlined_call_operand.hbm [shape: f32[8,128], index: 0, kind: input, shape index: {}]   ;;  %s1819_s1 = inlined_call_operand.hbm [shape: bf16[128,128], index: 1, kind: input, shape index: {}]   ;;  %s1820_s2 = inlined_call_operand.vmem [shape: f32[2,1,128], index: 2, kind: input, shape index: {}]   ;;  %s1821_s3 = inlined_call_operand.vmem [shape: f32[2,1,128], index: 3, kind: input, shape index: {}]   ;;  %s1822_s4 = inlined_call_operand.hbm [shape: bf16[2,128,128], index: 4, kind: input, shape index: {}]   ;;  %s1823_s5 = inlined_call_operand.hbm [shape: bf16[128,128], index: 5, kind: input, shape index: {}]   ;;  %s1824_s6 = inlined_call_operand.hbm [shape: f32[8,128], index: 6, kind: output, shape index: {}]  }
   0x1   :  { %12 = vsyncpa [#allocation7], 0 }
   0x2   :  { %13 = vsyncpa [#allocation5], 0  ;;  %s1598_s21 = smov 0   ;;  %s1600_s22 = smov 0  }
   0x3   :  { %s1602_s23 = smov 0   ;;  %s1604_s24 = smov 0  }
   0x4 LB: > { %s1617_s25 = sadd.s32 4294967295, %s1547_s24   ;;  %p157_p0 = scmp.ne.s32.totalorder %s1543_s23, %s1539_s22  ;;  %s1547_s24 = sphi %s1604_s24, %s1849_s24   ;;  %s1543_s23 = sphi %s1602_s23, %s1848_s23   ;;  %s1539_s22 = sphi %s1600_s22, %s1847_s22   ;;  %s1535_s21 = sphi %s1598_s21, %s1846_s21  }
   0x5   : > { %p158_p1 = scmp.eq.s32.totalorder %s1547_s24, 0  ;;  %p163_p2 = scmp.ne.s32.totalorder %s1539_s22, %s1535_s21 }
   0x6   : > { %p1825_p3 = scmp.eq.s32.totalorder %s1617_s25, 0  ;;  %p1070_p4 = scmp.ge.s32.totalorder %s1547_s24, 1 }
   0x7   : > { %p1625_p5 = por %p158_p1, %p157_p0  ;;  %p216_p6 = scmp.lt.s32.totalorder %s1547_s24, 5 }
   0x8   : > { %p1632_p7 = por %p1825_p3, %p163_p2  ;;  %s1549_s29 = smov [#allocation3]  }
   0x9   : > { %p1637_p9 = pnand %p1070_p4, %p216_p6  ;;  %s229_s30 = sshll.u32 %s1549_s29, 4  ;;  %s230_s30 = int_to_ptr.vmem [resolvable:$true] %s229_s30 }
   0xa   : > { %s1831_s27 = scalar_select %p1632_p7, 1, 0 }
   0xb   : > { %s1832_s28 = scalar_select %p1637_p9, 1, 0 }
   0xc   : > { %p1273_p10 = pneg %p1637_p9  ;;  %p1290_p11 = scmp.lt.s32.totalorder %s1547_s24, 4 }
   0xd   : > { %s1550_s8 = smov [#allocation6]   ;;  %s1378_s11 = scalar_lea.vmem %s230_s30, 128 }
   0xe   : > { %p1646_p12 = pnand %p1273_p10, %p1825_p3  ;;  %s239_s9 = sshll.u32 %s1550_s8, 4  ;;  %s240_s9 = int_to_ptr.vmem [resolvable:$true] %s239_s9 }
   0xf   : > { %p1652_p13 = pnand %p1290_p11, %p1625_p5  ;;  %p1379_p1 = scmp.ne.s32.totalorder %s230_s30, %s1378_s11 }
  0x10   : > { %p1369_p0 = pneg %p1646_p12  ;;  %p1386_p6 = scmp.lt.s32.totalorder %s230_s30, %s230_s30 }
  0x11   : > { %s1834_s10 = scalar_select %p1652_p13, 1, 0 }
  0x12   : > { %p1381_p2 = pnand %p1379_p1, %p1369_p0  ;;  %p1387_p10 = scmp.lt.s32.totalorder %s1378_s11, %s1378_s11 }
  0x14   : > { %p1382_p4 = pneg %p1381_p2  ;;  %p1388_p8 = por %p1387_p10, %p1386_p6 }
  0x16   : > { %p1389_p3 = pnand %p1388_p8, %p1382_p4 }
  0x18   : > { %1392 = shalt.err (!%p1389_p3)
}
  0x19   : > { %1276 = dma.hbm_to_vmem [thread:$0]  (!%p1646_p12), %s1818_s0, 128, %s230_s30, [#allocation4]  }
  0x1a   : > { %s1404_s14 = scalar_lea.vmem %s240_s9, 1024  ;;  %p1412_p1 = scmp.lt.s32.totalorder %s240_s9, %s240_s9 }
  0x1b   : > { %p1405_p5 = scmp.ne.s32.totalorder %s240_s9, %s1404_s14  ;;  %p1413_p2 = scmp.lt.s32.totalorder %s1404_s14, %s1404_s14 }
  0x1d   : > { %p1407_p11 = pnand %p1405_p5, %p1369_p0  ;;  %p1414_p9 = por %p1413_p2, %p1412_p1 }
  0x1f   : > { %p1408_p7 = pneg %p1407_p11 }
  0x21   : > { %p1415_p13 = pnand %p1414_p9, %p1408_p7 }
  0x23   : > { %1418 = shalt.err (!%p1415_p13)
}
  0x24   : > { %s1551_s15 = smov 64   ;;  %s1552_s16 = smov 4  }
  0x25   : > { %1279 = dma.hbm_to_vmem [thread:$0]  (!%p1646_p12), %s1819_s1, 1024, %s240_s9, [#allocation7], %s1551_s15, %s1551_s15, %s1552_s16  }
  0x26   : > { %s1678_s19 = sadd.s32 1, %s1547_s24   ;;  %s1553_s20 = smov [#allocation9]  }
  0x27   : > { %s252_s21 = sshll.u32 %s1553_s20, 4  ;;  %p1829_p3 = scmp.gt.s32.totalorder %s1617_s25, 0  ;;  %s253_s21 = int_to_ptr.vmem [resolvable:$true] %s252_s21 }
  0x28   : > { %p1059_p7 = scmp.lt.s32.totalorder %s1617_s25, 1  ;;  %s1430_s26 = scalar_lea.vmem %s253_s21, 1024 }
  0x29   : > { %p1431_p8 = scmp.ne.s32.totalorder %s253_s21, %s1430_s26  ;;  %p1438_p4 = scmp.lt.s32.totalorder %s253_s21, %s253_s21 }
  0x2a   : > { %p1439_p6 = scmp.lt.s32.totalorder %s1430_s26, %s1430_s26 }
  0x2b   : > { %p1433_p9 = pnand %p1431_p8, %p1369_p0 }
  0x2c   : > { %p1440_p10 = por %p1439_p6, %p1438_p4 }
  0x2d   : > { %p1434_p13 = pneg %p1433_p9 }
  0x2f   : > { %p1441_p5 = pnand %p1440_p10, %p1434_p13 }
  0x31   : > { %1444 = shalt.err (!%p1441_p5)
}
  0x32   : > { %1282 = dma.hbm_to_vmem [thread:$0]  (!%p1646_p12), %s1823_s5, 1024, %s253_s21, [#allocation7], %s1551_s15, %s1551_s15, %s1552_s16  }
  0x33   : > { %s139_s8 = scalar_select %p1829_p3, %s1617_s25, 0 }
  0x34   : > { %s1064_s9 = sadd.s32 4294967295, %s1678_s19  ;;  %s150_s11 = sadd.s32 1, %s1543_s23 }
  0x35   : > { %s1851_s8 = smov (!%p1059_p7, %s139_s8), 1  ;;  %p143_p0 = scmp.gt.s32.totalorder %s1064_s9, 0 }
  0x36   : > { %p1065_p11 = scmp.lt.s32.totalorder %s1064_s9, 1  ;;  %s298_s7 = sand.u32 1, %s1547_s24  }
  0x37   : > { %s300_s12 = sand.u32 1, %s1543_s23   ;;  %s1853_s9 = smov (!%p143_p0, %s1064_s9), 0 }
  0x38   : > { %s1075_s13 = sshll.u32 %s300_s12, 6  ;;  %s1855_s9 = smov (!%p1065_p11, %s1853_s9), 1 }
  0x39   : > { %s1149_s14 = sshll.u32 %s1851_s8, 10  ;;  %s147_s17 = ssub.s32 %s1851_s8, %s1855_s9 }
  0x3a   : > { %s1705_s21 = scalar_lea.hbm %s1822_s4, %s1149_s14  ;;  %p148_p12 = scmp.eq.s32.totalorder %s147_s17, 0 }
  0x3b   : > { %s302_s26 = scalar_lea.vmem [#allocation8], %s1075_s13  ;;  %s1712_s30 = scalar_lea.sflag [#allocation4], %s298_s7 }
  0x3c   : > { %s314_s29 = sshll.u32 %s302_s26, 4  ;;  %s1445_s12 = scalar_lea.hbm %s1705_s21, 1024  ;;  %s1707_s29 = int_to_ptr.vmem [resolvable:$true] %s314_s29 }
  0x3d   : > { %s1710_s24 = scalar_select %p148_p12, %s1543_s23, %s150_s11  }
  0x3e   : > { %p1446_p1 = scmp.ne.s32.totalorder %s1705_s21, %s1445_s12  ;;  %p1835_p2 = scmp.ne.s32.totalorder %s1834_s10, 0 }
  0x3f   : > { %s1450_s14 = scalar_lea.hbm %s1822_s4, 2048  ;;  %p1451_p13 = scmp.lt.s32.totalorder %s1705_s21, %s1822_s4 }
  0x40   : > { %p1447_p7 = pneg %p1835_p2  ;;  %p1452_p4 = scmp.lt.s32.totalorder %s1450_s14, %s1445_s12 }
  0x42   : > { %p1448_p8 = pnand %p1447_p7, %p1446_p1  ;;  %p1453_p6 = por %p1452_p4, %p1451_p13 }
  0x44   : > { %p1449_p9 = pneg %p1448_p8 }
  0x46   : > { %p1454_p10 = pnand %p1453_p6, %p1449_p9 }
  0x48   : > { %1457 = shalt.err (!%p1454_p10)
}
  0x49   : > { %s1458_s11 = scalar_lea.vmem %s1707_s29, 1024  ;;  %s1554_s7 = smov [#allocation8]  }
  0x4a   : > { %p1459_p5 = scmp.ne.s32.totalorder %s1707_s29, %s1458_s11  ;;  %s1463_s13 = sshll.u32 %s1554_s7, 4  ;;  %s1464_s13 = int_to_ptr.vmem [resolvable:$false] %s1463_s13 }
  0x4b   : > { %s1465_s20 = scalar_lea.vmem %s1464_s13, 2048  ;;  %p1466_p12 = scmp.lt.s32.totalorder %s1707_s29, %s1464_s13 }
  0x4c   : > { %p1461_p0 = pnand %p1459_p5, %p1447_p7  ;;  %p1467_p1 = scmp.lt.s32.totalorder %s1465_s20, %s1458_s11 }
  0x4e   : > { %p1462_p11 = pneg %p1461_p0  ;;  %p1468_p8 = por %p1467_p1, %p1466_p12 }
  0x50   : > { %p1469_p3 = pnand %p1468_p8, %p1462_p11 }
  0x52   : > { %1472 = shalt.err (!%p1469_p3)
}
  0x53   : > { %1286 = dma.hbm_to_vmem [thread:$0]  (!%p1835_p2), %s1705_s21, 1024, %s1707_s29, %s1712_s30, %s1551_s15, %s1551_s15, %s1552_s16  }
  0x54   : > { %p1836_p7 = scmp.ne.s32.totalorder %s1832_s28, 0 }
  0x55   : > { %p1837_p9 = scmp.eq.s32.totalorder (!%p1836_p7), %s1617_s25, 0 }
  0x56   : > { %326 = sbr.rel (%p1836_p7) target bundleno = 1040 (0x410), region = 44 }
  0x5b   : > { %1514 = dma.done.wait (%p1837_p9), [#allocation4], 128   ;;  %p1838_p13 = pmov %p1837_p9 }
  0x5c   : > { %p1839_p3 = pmov %p1837_p9 }
  0x5d   : > { %1516 = vsyncadd (%p1838_p13), [#allocation4], 4294967168 }
  0x5e   : > { %1518 = dma.done.wait (%p1839_p3), [#allocation7], 1024   ;;  %p1840_p4 = pmov %p1839_p3 }
  0x5f   : > { %s336_s10 = sand.u32 1, %s1617_s25   ;;  %s338_s15 = sand.u32 1, %s1539_s22  }
  0x60   : > { %1520 = vsyncadd (%p1840_p4), [#allocation7], 4294966272  ;;  %s1087_s16 = sshll.u32 %s338_s15, 6  ;;  %s337_s28 = scalar_lea.sflag [#allocation4], %s336_s10 }
  0x61   : > { %s1748_s21 = scalar_lea.vmem [#allocation8], %s1087_s16  ;;  %p1841_p2 = scmp.ne.s32.totalorder %s1831_s27, 0 }
  0x63   : > { %1522 = dma.done.wait (%p1841_p2), %s337_s28, 1024  }
  0x64   : > { %1524 = vsyncadd (%p1841_p2), %s337_s28, 4294966272  ;;  %p1842_p6 = pmov %p1839_p3 }
  0x65   : > { %p1843_p10 = pmov %p1839_p3 }
  0x66   : > { %1526 = dma.done.wait (%p1842_p6), [#allocation7], 1024  }
  0x67   : > { %1528 = vsyncadd (%p1843_p10), [#allocation7], 4294966272  ;;  %s1089_s26 = sadd.s32 4294967295, %s1617_s25  ;;  %p1844_p12 = scmp.ne.s32.totalorder %s1617_s25, 0 }
  0x68   : > { %p385_p5 = scmp.gt.s32.totalorder %s1089_s26, 0  ;;  %p1090_p0 = scmp.lt.s32.totalorder %s1089_s26, 1 }
  0x6a   : > { %s1857_s26 = smov (!%p385_p5, %s1089_s26), 0 }
  0x6b   : > { %s1859_s26 = smov (!%p1090_p0, %s1857_s26), 1  ;;  %419 = sbr.rel (%p1844_p12) target bundleno = 344 (0x158), region = 64 }
  0x6c   : > { %p389_p11 = scmp.lt.s32.totalorder %s1859_s26, 1 }
  0x6e   : > { %s1861_s26 = smov (!%p389_p11, %s1859_s26), 1 }
  0x6f   : > { %s391_s27 = scalar_lea.vmem %s1820_s2, %s1861_s26  ;;  %s404_s9 = scalar_lea.vmem %s1821_s3, %s1861_s26 }
  0x70   : > { %v1341_v0 = vld [vmem:[#allocation6 + $0x38] sm:$0xff]   ;;  %v1555_v1 = vmov 0.0   ;;  %v1342_v2 = vld [vmem:[#allocation6 + $0x30] sm:$0xff]   ;;  %vm1556_vm0 = vmmov 0   ;;  %v1343_v3 = vld [vmem:[#allocation6 + $0x28] sm:$0xff]  }
  0x71   : > { %1185 = vmatprep.subr.bf16.mxu0 %v1555_v1  ;;  %1201 = vmatprep.mubr.msk.bf16.mxu0 %vm1556_vm0, %v1555_v1  ;;  %v1344_v4 = vld [vmem:[#allocation6 + $0x20] sm:$0xff]   ;;  %v1345_v5 = vld [vmem:[#allocation6 + $0x18] sm:$0xff]   ;;  %v1346_v6 = vld [vmem:[#allocation6 + $0x10] sm:$0xff]  }
  0x72   : > { %1186 = vmatpush3.bf16.msra.mxu0 %v1341_v0  ;;  %v1347_v7 = vld [vmem:[#allocation6 + $0x8] sm:$0xff]   ;;  %v1348_v8 = vld [vmem:[#allocation6] sm:$0xff]   ;;  %v420_v9 = vld [vmem:[#allocation3] sm:$0xff] }
  0x73   : > { %1187 = vmatprep.subr.bf16.mxu0 %v1555_v1  ;;  %v421_v10 = vpack.c.bf16 %v420_v9, %v420_v9 }
  0x76   : > { %1188 = vmatpush3.bf16.msra.mxu0 %v1342_v2 }
  0x77   : > { %1189 = vmatprep.subr.bf16.mxu0 %v1555_v1 }
  0x7a   : > { %1190 = vmatpush3.bf16.msra.mxu0 %v1343_v3 }
  0x7b   : > { %1191 = vmatprep.subr.bf16.mxu0 %v1555_v1 }
  0x7e   : > { %1192 = vmatpush3.bf16.msra.mxu0 %v1344_v4 }
  0x7f   : > { %1193 = vmatprep.subr.bf16.mxu0 %v1555_v1 }
  0x82   : > { %1194 = vmatpush3.bf16.msra.mxu0 %v1345_v5 }
  0x83   : > { %1195 = vmatprep.subr.bf16.mxu0 %v1555_v1 }
  0x86   : > { %1196 = vmatpush3.bf16.msra.mxu0 %v1346_v6 }
  0x87   : > { %1197 = vmatprep.subr.bf16.mxu0 %v1555_v1 }
  0x8a   : > { %1198 = vmatpush3.bf16.msra.mxu0 %v1347_v7 }
  0x8b   : > { %1199 = vmatprep.subr.bf16.mxu0 %v1555_v1 }
  0x8e   : > { %1200 = vmatpush3.bf16.msra.mxu0 %v1348_v8 }
  0x91   : > { %1202 = vmatmul.mubr.bf16.vlgmr.msra.gmra.mxu0 %v421_v10 }
 0x151   : > { %v520_v11 = vpop.f32.mrf.mxu0 }
 0x152   : > { %526 = vst [vmem:[#allocation2] sm:$0xff] %v520_v11 }
 0x153   : > { %v1203_v12 = vpop.f32.mrf.mxu0 }
 0x155   : > { %v523_v13 = vpop.f32.mrf.mxu0 }
 0x157   : > { %v1204_v14 = vpop.f32.mrf.mxu0 }
 0x158 PF: > { %p528_p1 = scmp.lt.s32.totalorder %s1617_s25, 3  ;;  %p1845_p8 = scmp.gt.s32.totalorder %s1617_s25, 0 }
 0x15a   : > { %p529_p7 = pnand %p528_p1, %p1845_p8 }
 0x15c   : > { %532 = sbr.rel (%p529_p7) target bundleno = 786 (0x312), region = 68 }
 0x161   : > { %v533_v15 = vld [vmem:[#allocation2] sm:$0xff]  ;;  %vm534_vm1 = vcmask 64512   ;;  %v1557_v16 = vmov 0.0   ;;  %vm1558_vm2 = vmmov 0   ;;  %v1559_v18 = vmov 1.0   ;;  %v1349_v19 = vld [vmem:[%s1748_s21 + $0x38] sm:$0xff]  }
 0x162   : > { %1205 = vmatprep.subr.mxu1 %v1557_v16  ;;  %1207 = vmatprep.mubr.msk.f32.mxu1 %vm1558_vm2, %v1557_v16  ;;  %v608_v17 = vmul.f32 %v533_v15, %v533_v15  ;;  %v1350_v20 = vld [vmem:[%s1748_s21 + $0x30] sm:$0xff]   ;;  %v1351_v21 = vld [vmem:[%s1748_s21 + $0x28] sm:$0xff]   ;;  %v1352_v22 = vld [vmem:[%s1748_s21 + $0x20] sm:$0xff]   ;;  %v684_v36 = vlaneseq }
 0x163   : > { %1206 = vmatpush3.msra.mxu1 %v533_v15  ;;  %1215 = vmatprep.subr.bf16.mxu0 %v1557_v16  ;;  %v1353_v23 = vld [vmem:[%s1748_s21 + $0x18] sm:$0xff]   ;;  %v1354_v24 = vld [vmem:[%s1748_s21 + $0x10] sm:$0xff]   ;;  %v1355_v25 = vld [vmem:[%s1748_s21 + $0x8] sm:$0xff]  }
 0x164   : > { %1208 = vmatmul.mubr.msk.f32.vlgmr.msra.gmra.mxu1 %vm534_vm1, %v1559_v18  ;;  %1210 = vmatprep.subr.mxu1 %v1557_v16  ;;  %v1356_v26 = vld [vmem:[%s1748_s21] sm:$0xff]   ;;  %v685_v38 = vshrl.u32 %v684_v36, 7  ;;  %v1112_v44 = vld [vmem:[%s391_s27] ss:$0 sm:$0xff] }
 0x165   : > { %1211 = vmatpush3.msra.mxu1 %v608_v17  ;;  %1212 = vmatprep.mubr.msk.f32.mxu1 %vm1558_vm2, %v1557_v16  ;;  %v1113_v46 = vld [vmem:[%s404_s9] ss:$0 sm:$0xff] }
 0x166   : > { %1231 = vmatprep.mubr.msk.bf16.mxu0 %vm1558_vm2, %v1557_v16  ;;  %1216 = vmatpush3.bf16.msra.mxu0 %v1349_v19  ;;  %v686_v39 = vsub.s32 0, %v685_v38 }
 0x167   : > { %1217 = vmatprep.subr.bf16.mxu0 %v1557_v16 }
 0x168   : > { %1213 = vmatmul.mubr.msk.f32.vlgmr.msra.gmra.mxu1 %vm534_vm1, %v1559_v18 }
 0x16a   : > { %1218 = vmatpush3.bf16.msra.mxu0 %v1350_v20 }
 0x16b   : > { %1219 = vmatprep.subr.bf16.mxu0 %v1557_v16 }
 0x16e   : > { %1220 = vmatpush3.bf16.msra.mxu0 %v1351_v21 }
 0x16f   : > { %1221 = vmatprep.subr.bf16.mxu0 %v1557_v16 }
 0x172   : > { %1222 = vmatpush3.bf16.msra.mxu0 %v1352_v22 }
 0x173   : > { %1223 = vmatprep.subr.bf16.mxu0 %v1557_v16 }
 0x176   : > { %1224 = vmatpush3.bf16.msra.mxu0 %v1353_v23 }
 0x177   : > { %1225 = vmatprep.subr.bf16.mxu0 %v1557_v16 }
 0x17a   : > { %1226 = vmatpush3.bf16.msra.mxu0 %v1354_v24 }
 0x17b   : > { %1227 = vmatprep.subr.bf16.mxu0 %v1557_v16 }
 0x17e   : > { %1228 = vmatpush3.bf16.msra.mxu0 %v1355_v25 }
 0x17f   : > { %1229 = vmatprep.subr.bf16.mxu0 %v1557_v16 }
 0x182   : > { %1230 = vmatpush3.bf16.msra.mxu0 %v1356_v26 }
 0x224   : > { %v604_v27 = vpop.f32.mrf.mxu1 }
 0x225   : > { %v679_v28 = vmul.f32 0.125, %v604_v27 }
 0x226   : > { %v1209_v29 = vpop.f32.mrf.mxu1 }
 0x227   : > { %v681_v31 = vmul.f32 %v679_v28, %v679_v28  ;;  %v687_v40 = vrot.slane %v679_v28, %v686_v39 }
 0x228   : > { %v675_v30 = vpop.f32.mrf.mxu1 }
 0x229   : > { %v680_v32 = vmul.f32 0.125, %v675_v30  ;;  %v688_v42 = vsub.f32 %v533_v15, %v687_v40 }
 0x22a   : > { %v1214_v33 = vpop.f32.mrf.mxu1 }
 0x22b   : > { %v682_v34 = vsub.f32 %v680_v32, %v681_v31 }
 0x22d   : > { %v683_v35 = vmax.f32 %v682_v34, 0.0 }
 0x22f   : > { %v689_v37 = vadd.f32 1e-05, %v683_v35 }
 0x231   : > { %1357 = vrsqrt.f32 %v689_v37 }
 0x23e   : > { %v1358_v41 = vpop.eup %1357 }
 0x23f   : > { %v694_v43 = vrot.slane %v1358_v41, %v686_v39 }
 0x241   : > { %v695_v45 = vmul.f32 %v694_v43, %v688_v42 }
 0x243   : > { %v703_v47 = vmul.f32 %v1112_v44, %v695_v45 }
 0x245   : > { %v711_v48 = vadd.f32 %v1113_v46, %v703_v47 }
 0x247   : > { %v712_v49 = vmax.f32 %v711_v48, 0.0 }
 0x249   : > { %v713_v50 = vpack.c.bf16 %v712_v49, %v712_v49 }
 0x24b   : > { %1232 = vmatmul.mubr.bf16.vlgmr.msra.gmra.mxu0 %v713_v50 }
 0x30b   : > { %v812_v51 = vpop.f32.mrf.mxu0 }
 0x30c   : > { %818 = vst [vmem:[#allocation2] sm:$0xff] %v812_v51 }
 0x30d   : > { %v1233_v52 = vpop.f32.mrf.mxu0 }
 0x30f   : > { %v815_v53 = vpop.f32.mrf.mxu0 }
 0x311   : > { %v1234_v54 = vpop.f32.mrf.mxu0 }
 0x312 PF: > { %p1122_p9 = scmp.ne.s32.totalorder %s1617_s25, 3 }
 0x314   : > { %822 = sbr.rel (%p1122_p9) target bundleno = 1025 (0x401), region = 72 }
 0x319   : > { %v1359_v55 = vld [vmem:[#allocation9 + $0x38] sm:$0xff]   ;;  %v1560_v56 = vmov 0.0   ;;  %v1360_v57 = vld [vmem:[#allocation9 + $0x30] sm:$0xff]   ;;  %vm1561_vm3 = vmmov 0   ;;  %v1361_v58 = vld [vmem:[#allocation9 + $0x28] sm:$0xff]  }
 0x31a   : > { %1235 = vmatprep.subr.bf16.mxu0 %v1560_v56  ;;  %1251 = vmatprep.mubr.msk.bf16.mxu0 %vm1561_vm3, %v1560_v56  ;;  %v1362_v59 = vld [vmem:[#allocation9 + $0x20] sm:$0xff]   ;;  %v1363_v60 = vld [vmem:[#allocation9 + $0x18] sm:$0xff]   ;;  %v1364_v61 = vld [vmem:[#allocation9 + $0x10] sm:$0xff]  }
 0x31b   : > { %1236 = vmatpush3.bf16.msra.mxu0 %v1359_v55  ;;  %v1365_v62 = vld [vmem:[#allocation9 + $0x8] sm:$0xff]   ;;  %v1366_v63 = vld [vmem:[#allocation9] sm:$0xff]   ;;  %v823_v0 = vld [vmem:[#allocation2] sm:$0xff] }
 0x31c   : > { %1237 = vmatprep.subr.bf16.mxu0 %v1560_v56  ;;  %v824_v1 = vpack.c.bf16 %v823_v0, %v823_v0 }
 0x31f   : > { %1238 = vmatpush3.bf16.msra.mxu0 %v1360_v57 }
 0x320   : > { %1239 = vmatprep.subr.bf16.mxu0 %v1560_v56 }
 0x323   : > { %1240 = vmatpush3.bf16.msra.mxu0 %v1361_v58 }
 0x324   : > { %1241 = vmatprep.subr.bf16.mxu0 %v1560_v56 }
 0x327   : > { %1242 = vmatpush3.bf16.msra.mxu0 %v1362_v59 }
 0x328   : > { %1243 = vmatprep.subr.bf16.mxu0 %v1560_v56 }
 0x32b   : > { %1244 = vmatpush3.bf16.msra.mxu0 %v1363_v60 }
 0x32c   : > { %1245 = vmatprep.subr.bf16.mxu0 %v1560_v56 }
 0x32f   : > { %1246 = vmatpush3.bf16.msra.mxu0 %v1364_v61 }
 0x330   : > { %1247 = vmatprep.subr.bf16.mxu0 %v1560_v56 }
 0x333   : > { %1248 = vmatpush3.bf16.msra.mxu0 %v1365_v62 }
 0x334   : > { %1249 = vmatprep.subr.bf16.mxu0 %v1560_v56 }
 0x337   : > { %1250 = vmatpush3.bf16.msra.mxu0 %v1366_v63 }
 0x33a   : > { %1252 = vmatmul.mubr.bf16.vlgmr.msra.gmra.mxu0 %v824_v1 }
 0x3fa   : > { %v923_v2 = vpop.f32.mrf.mxu0 }
 0x3fb   : > { %929 = vst [vmem:[#allocation10] sm:$0xff] %v923_v2 }
 0x3fc   : > { %v1253_v3 = vpop.f32.mrf.mxu0 }
 0x3fe   : > { %v926_v4 = vpop.f32.mrf.mxu0 }
 0x400   : > { %v1254_v5 = vpop.f32.mrf.mxu0 }
 0x401 PF: > { %p1294_p13 = scmp.eq.s32.totalorder %s1617_s25, 3  ;;  %s1562_s7 = smov [#allocation10]  }
 0x402   : > { %s937_s13 = sshll.u32 %s1562_s7, 4  ;;  %s938_s13 = int_to_ptr.vmem [resolvable:$true] %s937_s13 }
 0x403   : > { %s1473_s20 = scalar_lea.vmem %s938_s13, 128  ;;  %p1480_p6 = scmp.lt.s32.totalorder %s938_s13, %s938_s13 }
 0x404   : > { %p1474_p3 = scmp.ne.s32.totalorder %s938_s13, %s1473_s20  ;;  %p1481_p10 = scmp.lt.s32.totalorder %s1473_s20, %s1473_s20 }
 0x406   : > { %p1475_p4 = pnand %p1474_p3, %p1294_p13  ;;  %p1482_p5 = por %p1481_p10, %p1480_p6 }
 0x408   : > { %p1476_p2 = pneg %p1475_p4 }
 0x40a   : > { %p1483_p0 = pnand %p1482_p5, %p1476_p2 }
 0x40c   : > { %1486 = shalt.err (!%p1483_p0)
}
 0x40d   : > { %1270 = dma.vmem_to_hbm [thread:$0]  (%p1294_p13), %s938_s13, 128, %s1824_s6, [#allocation5]  }
 0x40e   : > { %1530 = dma.done.wait (%p1294_p13), [#allocation5], 128  }
 0x40f   : > { %1532 = vsyncadd (%p1294_p13), [#allocation5], 4294967168 }
 0x410 PF: > { %p16_p11 = scmp.ge.s32.totalorder %s1678_s19, 6   ;;  %s1846_s21 = smov %s1539_s22 }
 0x411   : > { %s1847_s22 = smov %s1543_s23  ;;  %s1848_s23 = smov %s1710_s24 }
 0x412   : > { %s1849_s24 = smov %s1678_s19  ;;  %18 = sbr.rel (!%p16_p11) target bundleno = 4 (0x4), region = 110 }
 0x417   :  { %950 = vsyncpa [#allocation4], 1 }
 0x418   :  { %952 = vsyncpa [#allocation4 + $0x1], 1 }
 0x419   :  { %953 = vsyncpa [#allocation7], 1 }
 0x41a   :  { %954 = vsyncpa [#allocation5], 1 }
 0x41b   :  { %956 = vsyncpa [#allocation5 + $0x1], 1 }

</bundles_post_ra>
